<compile_context>
chip_gen: v7x
topology: tpu7x:2x2x1
jax: 0.10.0
libtpu: 0.0.40
codegen_flags: <defaults>
</compile_context>

<pallas_src>
import functools

import jax
import jax.numpy as jnp
from jax.experimental import pallas as pl
from jax.experimental.pallas import tpu as pltpu

EPS = 1e-5
LANES = 128        # pad C_out up to a multiple of this -> lane-dense output / MXU N-dim
MAX_TL = 512       # rows per tile cap (keeps double-buffered VMEM blocks small, v7x-safe)
VMEM_LIMIT = 32 * 1024 * 1024


def conv_stats_kernel(x_ref, w_ref, y_ref, stats_ref, *, TL, L_out, K, stride, T):
    """Phase 1: conv (K shifted matmuls) + global per-channel sum / sumsq accumulation.

    x_ref:     (1, L_x, C_in)  f32  -- full padded slab for this batch (re-fetched per batch only)
    w_ref:     (K, C_in, Cp)   bf16 -- resident across the whole grid
    y_ref:     (1, TL, Cp)     bf16 -- raw conv output tile (lane-dense)
    stats_ref: (8, Cp)         f32  -- row 0: sum(y), row 1: sum(y^2); resident accumulator
    """
    n_i = pl.program_id(0)
    t_i = pl.program_id(1)

    @pl.when((n_i == 0) & (t_i == 0))
    def _init():
        stats_ref[...] = jnp.zeros_like(stats_ref)

    # First padded-input row used by this tile of output positions.
    r0 = t_i * (TL * stride)

    acc = None
    for k in range(K):  # small K -> unrolled
        if stride == 1:
            xk = x_ref[0, pl.ds(r0 + k, TL), :]
        else:
            xk = x_ref[0, pl.ds(r0 + k, TL, stride), :]
        part = jnp.dot(xk.astype(jnp.bfloat16), w_ref[k],
                       preferred_element_type=jnp.float32)      # (TL, Cp) f32
        acc = part if acc is None else acc + part

    # Mask rows past the real L_out (only exists when L_out is not tile-aligned).
    if T * TL != L_out:
        rows = t_i * TL + jax.lax.broadcasted_iota(jnp.int32, acc.shape, 0)
        acc_stats = jnp.where(rows < L_out, acc, 0.0)
    else:
        acc_stats = acc

    stats_ref[0:1, :] += jnp.sum(acc_stats, axis=0, keepdims=True)
    stats_ref[1:2, :] += jnp.sum(acc_stats * acc_stats, axis=0, keepdims=True)
    y_ref[0, :, :] = acc.astype(y_ref.dtype)


def bn_relu_kernel(stats_ref, gamma_ref, beta_ref, y_ref, o_ref, *, inv_m):
    """Phase 2: fused BN scale/shift + ReLU (single pass over y)."""
    mean = stats_ref[0:1, :] * inv_m                       # (1, Cp)
    var = stats_ref[1:2, :] * inv_m - mean * mean          # biased variance (train mode)
    scale = gamma_ref[...] * jax.lax.rsqrt(var + EPS)      # (1, Cp)
    shift = beta_ref[...] - mean * scale
    y = y_ref[...].astype(jnp.float32)                     # (1, TL, Cp)
    o_ref[...] = jnp.maximum(y * scale + shift, 0.0).astype(o_ref.dtype)


def relu_conv_bn(x, weight, gamma, beta, *, stride, padding):
    """x: [N, C_in, L] (NCL). weight: [C_out, C_in, K]. Returns [N, C_out, L_out]."""
    N, C_in, L = x.shape
    C_out, _, K = weight.shape
    L_out = (L + 2 * padding - K) // stride + 1

    Cp = ((C_out + LANES - 1) // LANES) * LANES            # lane-dense channel padding

    # Tile the output length. Full-extent tile when small, otherwise 512 (mult. of 8).
    if L_out <= MAX_TL:
        TL, T = L_out, 1
    else:
        TL = MAX_TL
        T = pl.cdiv(L_out, TL)
    L_out_pad = T * TL

    # Pad the input along L: conv zero-padding plus enough extra zeros so the last
    # (possibly partial) tile's windows stay in bounds.
    L_need = (L_out_pad - 1) * stride + K
    L_x = max(L + 2 * padding, L_need)
    pad_right = L_x - L - padding
    xp = jnp.pad(x.astype(jnp.float32), ((0, 0), (0, 0), (padding, pad_right)))
    # NLC layout: rows = positions, lanes = channels.
    # NOTE: the whole per-batch slab is kept resident in VMEM (fine for 1-D NAS-cell
    # lengths); for very long sequences X would also need to be windowed over L.
    X = xp.transpose(0, 2, 1)                              # [N, L_x, C_in] f32

    W = jnp.zeros((K, C_in, Cp), jnp.bfloat16).at[:, :, :C_out].set(
        weight.transpose(2, 1, 0).astype(jnp.bfloat16))    # [K, C_in, Cp] bf16
    g = jnp.zeros((1, Cp), jnp.float32).at[0, :C_out].set(gamma.astype(jnp.float32))
    b = jnp.zeros((1, Cp), jnp.float32).at[0, :C_out].set(beta.astype(jnp.float32))

    # ---- Phase 1: conv + global stats ----
    y_flat, stats = pl.pallas_call(
        functools.partial(conv_stats_kernel, TL=TL, L_out=L_out, K=K, stride=stride, T=T),
        out_shape=(
            jax.ShapeDtypeStruct((N, L_out_pad, Cp), jnp.bfloat16),   # raw conv output
            jax.ShapeDtypeStruct((8, Cp), jnp.float32),               # [sum; sumsq] accumulator
        ),
        grid=(N, T),
        in_specs=[
            pl.BlockSpec((1, L_x, C_in), lambda n, t: (n, 0, 0)),
            pl.BlockSpec((K, C_in, Cp), lambda n, t: (0, 0, 0)),
        ],
        out_specs=[
            pl.BlockSpec((1, TL, Cp), lambda n, t: (n, t, 0)),
            pl.BlockSpec((8, Cp), lambda n, t: (0, 0)),
        ],
        # Both axes "arbitrary": the stats output is a grid-wide accumulator.
        compiler_params=pltpu.CompilerParams(
            dimension_semantics=("arbitrary", "arbitrary"),
            vmem_limit_bytes=VMEM_LIMIT),
    )(X, W)

    # ---- Phase 2: fused BN (scale/shift) + ReLU ----
    out_flat = pl.pallas_call(
        functools.partial(bn_relu_kernel, inv_m=1.0 / float(N * L_out)),
        out_shape=jax.ShapeDtypeStruct((N, L_out_pad, Cp), jnp.float32),
        grid=(N, T),
        in_specs=[
            pl.BlockSpec((8, Cp), lambda n, t: (0, 0)),
            pl.BlockSpec((1, Cp), lambda n, t: (0, 0)),
            pl.BlockSpec((1, Cp), lambda n, t: (0, 0)),
            pl.BlockSpec((1, TL, Cp), lambda n, t: (n, t, 0)),
        ],
        out_specs=pl.BlockSpec((1, TL, Cp), lambda n, t: (n, t, 0)),
        compiler_params=pltpu.CompilerParams(
            dimension_semantics=("parallel", "parallel"),
            vmem_limit_bytes=VMEM_LIMIT),
    )(stats, g, b, y_flat)

    # Glue: drop channel/length padding, back to NCL.
    return out_flat[:, :L_out, :C_out].transpose(0, 2, 1)


def reference(x, weight, gamma, beta, *, stride, padding):
    """Pure-JAX f32 reference (conv1d + train-mode BN + ReLU)."""
    y = jax.lax.conv_general_dilated(
        x.astype(jnp.float32), weight.astype(jnp.float32),
        window_strides=(stride,), padding=[(padding, padding)],
        dimension_numbers=("NCH", "OIH", "NCH"),
    )
    mean = jnp.mean(y, axis=(0, 2), keepdims=True)
    var = jnp.mean((y - mean) ** 2, axis=(0, 2), keepdims=True)
    y_hat = (y - mean) * jax.lax.rsqrt(var + EPS)
    out = y_hat * gamma.reshape(1, -1, 1) + beta.reshape(1, -1, 1)
    return jnp.maximum(out, 0.0)


if __name__ == "__main__":
    # Module config: ReLUConvBn(C_in=4, C_out=8, kernel_size=3, stride=1, padding=1)
    N, C_in, C_out, L, K, stride, padding = 2, 4, 8, 16, 3, 1, 1
    L_out = (L + 2 * padding - K) // stride + 1

    key = jax.random.PRNGKey(0)
    kx, kw = jax.random.split(key)
    x = jax.random.normal(kx, (N, C_in, L), dtype=jnp.float32)
    weight = jax.random.normal(kw, (C_out, C_in, K), dtype=jnp.float32) * 0.1
    gamma = jnp.ones((C_out,), dtype=jnp.float32)   # BatchNorm1d default weight
    beta = jnp.zeros((C_out,), dtype=jnp.float32)   # BatchNorm1d default bias

    out = relu_conv_bn(x, weight, gamma, beta, stride=stride, padding=padding)
    out = jax.block_until_ready(out)

    ref = reference(x, weight, gamma, beta, stride=stride, padding=padding)
    assert out.shape == (N, C_out, L_out), out.shape
    # bf16 MXU inputs + bf16 intermediate -> tolerance relaxed vs the all-f32 reference.
    err = float(jnp.max(jnp.abs(out - ref)))
    assert jnp.allclose(out, ref, atol=2e-2, rtol=2e-2), err

    # TODO(synk): BatchNorm1d running-mean/var buffer updates are stateful and not part
    # of the forward output; they are not implemented here.
    print("KERNEL_OK")
</pallas_src>

<mosaic_0001>
module attributes {stable_mosaic.version = 11 : i64} {
  func.func @conv_stats_kernel(%arg0: i32, %arg1: i32, %arg2: memref<1x18x4xf32, #tpu.memory_space<vmem>>, %arg3: memref<3x4x128xbf16, #tpu.memory_space<vmem>>, %arg4: memref<1x16x128xbf16, #tpu.memory_space<vmem>>, %arg5: memref<8x128xf32, #tpu.memory_space<vmem>>) attributes {dimension_semantics = [#tpu.dimension_semantics<arbitrary>, #tpu.dimension_semantics<arbitrary>], iteration_bounds = array<i64: 2, 1>, scalar_prefetch = 0 : i64, scratch_operands = 0 : i64, tpu.core_type = #tpu.core_type<tc>, window_params = [{transform_indices = @transform_0, window_bounds = array<i64: 1, 18, 4>}, {pipeline_mode = #tpu.pipeline_mode<synchronous>, transform_indices = @transform_1, window_bounds = array<i64: 3, 4, 128>}, {transform_indices = @transform_2, window_bounds = array<i64: 1, 16, 128>}, {pipeline_mode = #tpu.pipeline_mode<synchronous>, transform_indices = @transform_3, window_bounds = array<i64: 8, 128>}]} {
    %c0_i32 = arith.constant 0 : i32
    %0 = arith.cmpi eq, %arg0, %c0_i32 : i32
    %c0_i32_0 = arith.constant 0 : i32
    %1 = arith.cmpi eq, %arg1, %c0_i32_0 : i32
    %2 = arith.andi %0, %1 : i1
    %3 = arith.extui %2 : i1 to i32
    %c0_i32_1 = arith.constant 0 : i32
    %4 = arith.cmpi ne, %3, %c0_i32_1 : i32
    scf.if %4 {
      %cst_30 = arith.constant 0.000000e+00 : f32
      %47 = vector.broadcast %cst_30 : f32 to vector<8x128xf32>
      %c0_31 = arith.constant 0 : index
      %c0_32 = arith.constant 0 : index
      %48 = vector.load %arg5[%c0_31, %c0_32] : memref<8x128xf32, #tpu.memory_space<vmem>>, vector<8x128xf32>
      tpu.vector_store %arg5[%c0_31, %c0_32], %47 {strides = array<i32>} : memref<8x128xf32, #tpu.memory_space<vmem>>, vector<8x128xf32>,
    } else {
    }
    %c16_i32 = arith.constant 16 : i32
    %5 = arith.muli %arg1, %c16_i32 : i32
    %c0_i32_2 = arith.constant 0 : i32
    %6 = arith.addi %5, %c0_i32_2 : i32
    %c0 = arith.constant 0 : index
    %7 = arith.index_cast %6 : i32 to index
    %c0_3 = arith.constant 0 : index
    %8 = vector.load %arg2[%c0, %7, %c0_3] : memref<1x18x4xf32, #tpu.memory_space<vmem>>, vector<1x16x4xf32>
    %9 = vector.shape_cast %8 : vector<1x16x4xf32> to vector<16x4xf32>
    %10 = arith.truncf %9 : vector<16x4xf32> to vector<16x4xbf16>
    %c0_4 = arith.constant 0 : index
    %c0_5 = arith.constant 0 : index
    %c0_6 = arith.constant 0 : index
    %11 = vector.load %arg3[%c0_4, %c0_5, %c0_6] : memref<3x4x128xbf16, #tpu.memory_space<vmem>>, vector<1x4x128xbf16>
    %12 = vector.shape_cast %11 : vector<1x4x128xbf16> to vector<4x128xbf16>
    %cst = arith.constant dense<0.000000e+00> : vector<16x128xf32>
    %13 = tpu.matmul %10, %12, %cst {dimension_numbers = #tpu.dot_dimension_numbers<[1], [0], [0], [1], [0, 0, 1, 1], [], []>} : vector<16x4xbf16>, vector<4x128xbf16>, vector<16x128xf32> -> vector<16x128xf32>
    %c1_i32 = arith.constant 1 : i32
    %14 = arith.addi %5, %c1_i32 : i32
    %c0_7 = arith.constant 0 : index
    %15 = arith.index_cast %14 : i32 to index
    %c0_8 = arith.constant 0 : index
    %16 = vector.load %arg2[%c0_7, %15, %c0_8] : memref<1x18x4xf32, #tpu.memory_space<vmem>>, vector<1x16x4xf32>
    %17 = vector.shape_cast %16 : vector<1x16x4xf32> to vector<16x4xf32>
    %18 = arith.truncf %17 : vector<16x4xf32> to vector<16x4xbf16>
    %c1 = arith.constant 1 : index
    %c0_9 = arith.constant 0 : index
    %c0_10 = arith.constant 0 : index
    %19 = vector.load %arg3[%c1, %c0_9, %c0_10] : memref<3x4x128xbf16, #tpu.memory_space<vmem>>, vector<1x4x128xbf16>
    %20 = vector.shape_cast %19 : vector<1x4x128xbf16> to vector<4x128xbf16>
    %cst_11 = arith.constant dense<0.000000e+00> : vector<16x128xf32>
    %21 = tpu.matmul %18, %20, %cst_11 {dimension_numbers = #tpu.dot_dimension_numbers<[1], [0], [0], [1], [0, 0, 1, 1], [], []>} : vector<16x4xbf16>, vector<4x128xbf16>, vector<16x128xf32> -> vector<16x128xf32>
    %22 = arith.addf %13, %21 : vector<16x128xf32>
    %c2_i32 = arith.constant 2 : i32
    %23 = arith.addi %5, %c2_i32 : i32
    %c0_12 = arith.constant 0 : index
    %24 = arith.index_cast %23 : i32 to index
    %c0_13 = arith.constant 0 : index
    %25 = vector.load %arg2[%c0_12, %24, %c0_13] : memref<1x18x4xf32, #tpu.memory_space<vmem>>, vector<1x16x4xf32>
    %26 = vector.shape_cast %25 : vector<1x16x4xf32> to vector<16x4xf32>
    %27 = arith.truncf %26 : vector<16x4xf32> to vector<16x4xbf16>
    %c2 = arith.constant 2 : index
    %c0_14 = arith.constant 0 : index
    %c0_15 = arith.constant 0 : index
    %28 = vector.load %arg3[%c2, %c0_14, %c0_15] : memref<3x4x128xbf16, #tpu.memory_space<vmem>>, vector<1x4x128xbf16>
    %29 = vector.shape_cast %28 : vector<1x4x128xbf16> to vector<4x128xbf16>
    %cst_16 = arith.constant dense<0.000000e+00> : vector<16x128xf32>
    %30 = tpu.matmul %27, %29, %cst_16 {dimension_numbers = #tpu.dot_dimension_numbers<[1], [0], [0], [1], [0, 0, 1, 1], [], []>} : vector<16x4xbf16>, vector<4x128xbf16>, vector<16x128xf32> -> vector<16x128xf32>
    %31 = arith.addf %22, %30 : vector<16x128xf32>
    %c0_17 = arith.constant 0 : index
    %c0_18 = arith.constant 0 : index
    %32 = vector.load %arg5[%c0_17, %c0_18] : memref<8x128xf32, #tpu.memory_space<vmem>>, vector<1x128xf32>
    %cst_19 = arith.constant dense<0.000000e+00> : vector<128xf32>
    %33 = vector.multi_reduction <add>, %31, %cst_19 [0] : vector<16x128xf32> to vector<128xf32>
    %34 = vector.shape_cast %33 : vector<128xf32> to vector<1x128xf32>
    %35 = arith.addf %32, %34 : vector<1x128xf32>
    %c0_20 = arith.constant 0 : index
    %c0_21 = arith.constant 0 : index
    %36 = vector.load %arg5[%c0_20, %c0_21] : memref<8x128xf32, #tpu.memory_space<vmem>>, vector<1x128xf32>
    tpu.vector_store %arg5[%c0_20, %c0_21], %35 {strides = array<i32>} : memref<8x128xf32, #tpu.memory_space<vmem>>, vector<1x128xf32>,
    %c1_22 = arith.constant 1 : index
    %c0_23 = arith.constant 0 : index
    %37 = vector.load %arg5[%c1_22, %c0_23] : memref<8x128xf32, #tpu.memory_space<vmem>>, vector<1x128xf32>
    %38 = arith.mulf %31, %31 : vector<16x128xf32>
    %cst_24 = arith.constant dense<0.000000e+00> : vector<128xf32>
    %39 = vector.multi_reduction <add>, %38, %cst_24 [0] : vector<16x128xf32> to vector<128xf32>
    %40 = vector.shape_cast %39 : vector<128xf32> to vector<1x128xf32>
    %41 = arith.addf %37, %40 : vector<1x128xf32>
    %c1_25 = arith.constant 1 : index
    %c0_26 = arith.constant 0 : index
    %42 = vector.load %arg5[%c1_25, %c0_26] : memref<8x128xf32, #tpu.memory_space<vmem>>, vector<1x128xf32>
    tpu.vector_store %arg5[%c1_25, %c0_26], %41 {strides = array<i32>} : memref<8x128xf32, #tpu.memory_space<vmem>>, vector<1x128xf32>,
    %43 = arith.truncf %31 : vector<16x128xf32> to vector<16x128xbf16>
    %c0_27 = arith.constant 0 : index
    %c0_28 = arith.constant 0 : index
    %c0_29 = arith.constant 0 : index
    %44 = vector.load %arg4[%c0_27, %c0_28, %c0_29] : memref<1x16x128xbf16, #tpu.memory_space<vmem>>, vector<1x16x128xbf16>
    %45 = vector.shape_cast %44 : vector<1x16x128xbf16> to vector<16x128xbf16>
    %46 = vector.shape_cast %43 : vector<16x128xbf16> to vector<1x16x128xbf16>
    tpu.vector_store %arg4[%c0_27, %c0_28, %c0_29], %46 {strides = array<i32>} : memref<1x16x128xbf16, #tpu.memory_space<vmem>>, vector<1x16x128xbf16>,
    return
  }
  func.func @transform_0(%arg0: i32, %arg1: i32) -> (i32, i32, i32) {
    %c0_i32 = arith.constant 0 : i32
    %c0_i32_0 = arith.constant 0 : i32
    %c0_i32_1 = arith.constant 0 : i32
    return %arg0, %c0_i32, %c0_i32_0 : i32, i32, i32
  }
  func.func @transform_1(%arg0: i32, %arg1: i32) -> (i32, i32, i32) {
    %c0_i32 = arith.constant 0 : i32
    %c0_i32_0 = arith.constant 0 : i32
    %c0_i32_1 = arith.constant 0 : i32
    %c0_i32_2 = arith.constant 0 : i32
    return %c0_i32, %c0_i32_0, %c0_i32_1 : i32, i32, i32
  }
  func.func @transform_2(%arg0: i32, %arg1: i32) -> (i32, i32, i32) {
    %c0_i32 = arith.constant 0 : i32
    %c0_i32_0 = arith.constant 0 : i32
    return %arg0, %arg1, %c0_i32 : i32, i32, i32
  }
  func.func @transform_3(%arg0: i32, %arg1: i32) -> (i32, i32) {
    %c0_i32 = arith.constant 0 : i32
    %c0_i32_0 = arith.constant 0 : i32
    %c0_i32_1 = arith.constant 0 : i32
    return %c0_i32, %c0_i32_0 : i32, i32
  }
}

</mosaic_0001>

<bundles_post_ra>
// kernel: tpu_custom_call.1
= control target key start
LH: loop header
LB: loop body
LE: loop exit
PB: predicated region body
PF: predicated region fallthrough
CT: control target
= control target key end

     0   :  { %9 = vsyncpa [#allocation3], 0  ;;  %s958_s0 = inlined_call_operand.vmem [shape: f32[2,18,4], index: 0, kind: input, shape index: {}]   ;;  %s959_s1 = inlined_call_operand.vmem [shape: bf16[3,4,128], index: 1, kind: input, shape index: {}]   ;;  %s960_s2 = inlined_call_operand.hbm [shape: bf16[2,16,128], index: 2, kind: output, shape index: {0}]   ;;  %s961_s3 = inlined_call_operand.hbm [shape: f32[8,128], index: 3, kind: output, shape index: {1}]  }
   0x1   :  { %11 = vsyncpa [#allocation3 + $0x1], 0 }
   0x2   :  { %12 = vsyncpa [#allocation5], 0  ;;  %s777_s12 = smov 0   ;;  %s779_s13 = smov 0  }
   0x3   :  { %s781_s14 = smov 0   ;;  %s783_s15 = smov 0  }
   0x4   :  { %s785_s16 = smov 0   ;;  %s787_s17 = smov 0  }
   0x5 LB: > { %s507_s18 = sadd.s32 4294967295, %s748_s17   ;;  %s508_s19 = sadd.s32 4294967294, %s748_s17   ;;  %s748_s17 = sphi %s787_s17, %s18_s17   ;;  %s744_s16 = sphi %s785_s16, %s969_s16   ;;  %s740_s15 = sphi %s783_s15, %s968_s15   ;;  %s736_s14 = sphi %s781_s14, %s967_s14   ;;  %s732_s13 = sphi %s779_s13, %s966_s13   ;;  %s728_s12 = sphi %s777_s12, %s965_s12  }
   0x6   : > { %s30_s20 = sadd.s32 1, %s744_s16  ;;  %s86_s21 = sadd.s32 1, %s736_s14 }
   0x7   : > { %p32_p0 = scmp.ge.s32.totalorder %s30_s20, 2  ;;  %p96_p1 = scmp.ne.s32.totalorder %s736_s14, %s732_s13 }
   0x8   : > { %p813_p2 = scmp.eq.s32.totalorder %s507_s18, 1  ;;  %p102_p3 = scmp.ne.s32.totalorder %s732_s13, %s728_s12 }
   0x9   : > { %s971_s20 = smov (%p32_p0, %s30_s20), 0  ;;  %p103_p5 = scmp.eq.s32.totalorder %s508_s19, 1 }
   0xa   : > { %p823_p4 = por %p813_p2, %p96_p1  ;;  %s81_s24 = ssub.s32 %s744_s16, %s971_s20 }
   0xb   : > { %p511_p6 = scmp.ge.s32.totalorder %s748_s17, 1  ;;  %p84_p7 = scmp.eq.s32.totalorder %s81_s24, 0 }
   0xc   : > { %p830_p8 = por %p103_p5, %p102_p3  ;;  %p153_p9 = scmp.lt.s32.totalorder %s748_s17, 3 }
   0xd   : > { %s836_s26 = scalar_select %p84_p7, %s736_s14, %s86_s21  }
   0xe   : > { %p154_p10 = pnand %p511_p6, %p153_p9 }
   0xf   : > { %s172_s27 = sand.u32 (!%p154_p10), 1, %s732_s13   ;;  %p177_p11 = scmp.lt.s32.totalorder (!%p154_p10), %s740_s15, 1 }
  0x10   : > { %157 = sbr.rel (%p154_p10) target bundleno = 308 (0x134), region = 28  ;;  %s842_s28 = sshll.u32 (!%p154_p10), %s172_s27, 3 }
  0x11   : > { %p184_p12 = scmp.eq.s32.totalorder (!%p154_p10), %s740_s15, 0  ;;  %s174_s7 = scalar_lea.vmem (!%p154_p10), [#allocation2], %s842_s28 }
  0x17   : > { %s178_s29 = scalar_select %p177_p11, %s740_s15, 1 }
  0x18   : > { %189 = sbr.rel (!%p184_p12) target bundleno = 31 (0x1f), region = 32  ;;  %v750_v0 = vmov (%p184_p12), 0.0  }
  0x19   : > { %s572_s30 = smul.u32 24, %s178_s29  ;;  %190 = vst [vmem:[#allocation4] sm:$0xff] (%p184_p12), %v750_v0 }
  0x1b   : > { %s849_s6 = scalar_lea.vmem %s958_s0, %s572_s30 }
  0x1f PF: > { %v196_v1 = vld [vmem:[%s959_s1] sm:$0x3]  ;;  %vm208_vm0 = vcmask 1041408   ;;  %v751_v3 = vmov 0.0   ;;  %vm752_vm1 = vmmov 0   ;;  %v194_v5 = vld [vmem:[%s849_s6 + $0x8] sm:$0xff] }
  0x20   : > { %v193_v2 = vld [vmem:[%s849_s6] sm:$0xff]  ;;  %554 = vmatprep.subr.bf16.mxu0 %v751_v3  ;;  %v257_v4 = vsel %vm208_vm0, %v196_v1, 0  ;;  %556 = vmatprep.mubr.msk.bf16.mxu0 %vm752_vm1, %v751_v3  ;;  %vm204_vm2 = vcmask 31744   ;;  %v516_v10 = vld [vmem:[%s849_s6 + $0x9] sm:$0xff]  ;;  %s536_s21 = sshll.u32 %s740_s15, 7  ;;  %s404_s24 = sshll.u32 %s174_s7, 4  ;;  %s884_s24 = int_to_ptr.vmem [resolvable:$true] %s404_s24 }
  0x21   : > { %v522_v6 = vld [vmem:[%s959_s1 + $0x4] sm:$0x3]  ;;  %555 = vmatpush3.bf16.msra.mxu0 %v257_v4  ;;  %v195_v8 = vpack.c.bf16 %v194_v5, %v193_v2  ;;  %548 = vmatprep.subr.bf16.mxu1 %v751_v3  ;;  %v517_v9 = vld [vmem:[%s959_s1 + $0x2] sm:$0x3]  ;;  %v521_v15 = vld [vmem:[%s849_s6 + $0xa] sm:$0xff]  ;;  %s882_s4 = scalar_lea.hbm %s960_s2, %s536_s21  ;;  %s890_s15 = scalar_lea.sflag [#allocation3], %s172_s27 }
  0x22   : > { %v515_v7 = vld [vmem:[%s849_s6 + $0x1] sm:$0xff]  ;;  %560 = vmatprep.subr.bf16.mxu0 %v751_v3  ;;  %v311_v11 = vsel %vm208_vm0, %v522_v6, 0  ;;  %v210_v12 = vsel %vm208_vm0, %v517_v9, 0  ;;  %550 = vmatprep.mubr.msk.bf16.mxu1 %vm752_vm1, %v751_v3  ;;  %s640_s5 = scalar_lea.vmem %s884_s24, 128 }
  0x23   : > { %v201_v13 = vpack.c.bf16 %v516_v10, %v515_v7  ;;  %549 = vmatpush3.bf16.msra.mxu1 %v210_v12  ;;  %v520_v14 = vld [vmem:[%s849_s6 + $0x2] sm:$0xff]  ;;  %p641_p13 = scmp.ne.s32.totalorder %s884_s24, %s640_s5  ;;  %s753_s6 = smov [#allocation2]  }
  0x24   : > { %557 = vmatmul.mubr.msk.bf16.vlgmr.msra.gmra.mrb[0].mxu0 %vm204_vm2, %v195_v8  ;;  %v304_v16 = vpack.c.bf16 %v521_v15, %v520_v14  ;;  %s644_s8 = sshll.u32 %s753_s6, 4  ;;  %s645_s8 = int_to_ptr.vmem [resolvable:$false] %s644_s8 }
  0x25   : > { %561 = vmatpush3.bf16.msra.mxu0 %v311_v11  ;;  %562 = vmatprep.mubr.msk.bf16.mxu0 %vm752_vm1, %v751_v3  ;;  %p642_p0 = pnand %p641_p13, %p823_p4  ;;  %s646_s9 = scalar_lea.vmem %s645_s8, 256 }
  0x26   : > { %551 = vmatmul.mubr.msk.bf16.vlgmr.msra.gmra.mrb[0].mxu1 %vm204_vm2, %v201_v13  ;;  %p647_p3 = scmp.lt.s32.totalorder %s884_s24, %s645_s8  ;;  %p648_p5 = scmp.lt.s32.totalorder %s646_s9, %s640_s5 }
  0x27   : > { %p643_p1 = pneg %p642_p0 }
  0x28   : > { %p649_p6 = por %p648_p5, %p647_p3 }
  0x2a   : > { %p650_p7 = pnand %p649_p6, %p643_p1 }
  0x30   : > { %563 = vmatmul.mubr.msk.bf16.vlgmr.msra.gmra.mrb[0].mxu0 %vm204_vm2, %v304_v16 }
  0xf9   : > { %v246_v17 = vpop.f32.mrb[0].mxu1 }
  0xfa   : > { %v552_v18 = vpop.f32.mrb[1].mxu1 }
  0xfb   : > { %v249_v19 = vpop.f32.mrb[2].mxu1 }
  0xfc   : > { %v553_v20 = vpop.f32.mrb[3].mxu1 }
 0x103   : > { %v347_v21 = vpop.f32.mrb[0].mxu0 }
 0x104   : > { %v566_v22 = vadd.f32 %v347_v21, %v246_v17  ;;  %v564_v23 = vpop.f32.mrb[1].mxu0 }
 0x105   : > { %v350_v24 = vpop.f32.mrb[2].mxu0 }
 0x106   : > { %v567_v25 = vadd.f32 %v350_v24, %v249_v19  ;;  %v565_v26 = vpop.f32.mrb[3].mxu0  ;;  %v367_v27 = vmul.f32 %v566_v22, %v566_v22 }
 0x108   : > { %v357_v28 = vadd.f32 %v567_v25, %v566_v22  ;;  %v368_v29 = vmul.f32 %v567_v25, %v567_v25  ;;  %v540_v30 = vpack.c.bf16 %v567_v25, %v566_v22 }
 0x10a   : > { %v358_v31 = vrot.slane %v357_v28, 4  ;;  %v369_v32 = vadd.f32 %v368_v29, %v367_v27  ;;  %541 = vst [vmem:[%s174_s7] sm:$0xff] %v540_v30  }
 0x10b   : > { %653 = shalt.err (!%p650_p7)
}
 0x10c   : > { %s654_s27 = scalar_lea.hbm %s882_s4, 128  ;;  %s658_s10 = scalar_lea.hbm %s960_s2, 256 }
 0x10d   : > { %p655_p9 = scmp.ne.s32.totalorder %s882_s4, %s654_s27  ;;  %p659_p12 = scmp.lt.u32.totalorder %s882_s4, %s960_s2 }
 0x10e   : > { %p660_p13 = scmp.lt.u32.totalorder %s658_s10, %s654_s27  ;;  %p662_p1 = scmp.lt.u32.totalorder %s654_s27, %s882_s4 }
 0x10f   : > { %p656_p10 = pnand %p655_p9, %p823_p4 }
 0x110   : > { %p661_p0 = por %p660_p13, %p659_p12 }
 0x111   : > { %p657_p11 = pneg %p656_p10 }
 0x112   : > { %p663_p3 = por %p662_p1, %p661_p0 }
 0x114   : > { %p664_p5 = pnand %p663_p3, %p657_p11 }
 0x116   : > { %667 = shalt.err (!%p664_p5)
}
 0x117   : > { %s754_s19 = smov 64   ;;  %s755_s21 = smov 4   ;;  %v359_v33 = vadd.f32 %v358_v31, %v357_v28  ;;  %v370_v34 = vrot.slane %v369_v32, 4  ;;  %v356_v41 = vld [vmem:[#allocation4] sm:$0x1] }
 0x118   : > { %573 = dma.vmem_to_hbm [thread:$0]  (%p823_p4), %s884_s24, 128, %s882_s4, %s890_s15, %s754_s19, %s754_s19, %s755_s21   ;;  %v366_v44 = vld [vmem:[#allocation4 + $0x1] sm:$0x1] }
 0x119   : > { %v360_v35 = vrot.slane %v359_v33, 2  ;;  %v371_v36 = vadd.f32 %v370_v34, %v369_v32  ;;  %s756_s29 = smov [#allocation4]  }
 0x11a   : > { %s418_s30 = sshll.u32 %s756_s29, 4  ;;  %s419_s30 = int_to_ptr.vmem [resolvable:$true] %s418_s30 }
 0x11b   : > { %v361_v37 = vadd.f32 %v360_v35, %v359_v33  ;;  %v372_v38 = vrot.slane %v371_v36, 2  ;;  %s668_s23 = scalar_lea.vmem %s419_s30, 128  ;;  %p675_p9 = scmp.lt.s32.totalorder %s419_s30, %s419_s30 }
 0x11c   : > { %p669_p4 = scmp.ne.s32.totalorder %s419_s30, %s668_s23  ;;  %p676_p10 = scmp.lt.s32.totalorder %s668_s23, %s668_s23 }
 0x11d   : > { %v362_v39 = vrot.slane %v361_v37, 1  ;;  %v373_v40 = vadd.f32 %v372_v38, %v371_v36 }
 0x11e   : > { %p670_p6 = pnand %p669_p4, %p813_p2  ;;  %p677_p11 = por %p676_p10, %p675_p9 }
 0x11f   : > { %v363_v42 = vadd.f32 %v362_v39, %v361_v37  ;;  %v374_v43 = vrot.slane %v373_v40, 1 }
 0x120   : > { %p671_p7 = pneg %p670_p6 }
 0x121   : > { %v364_v45 = vadd.f32 %v363_v42, %v356_v41  ;;  %v375_v46 = vadd.f32 %v374_v43, %v373_v40 }
 0x122   : > { %p678_p12 = pnand %p677_p11, %p671_p7 }
 0x123   : > { %365 = vst [vmem:[#allocation4] sm:$0x1] %v364_v45  ;;  %v376_v47 = vadd.f32 %v375_v46, %v366_v44 }
 0x125   : > { %377 = vst [vmem:[#allocation4 + $0x1] sm:$0x1] %v376_v47 }
 0x126   : > { %681 = shalt.err (!%p678_p12)
}
 0x127   : > { %s682_s15 = scalar_lea.hbm %s961_s3, 128 }
 0x128   : > { %p683_p13 = scmp.ne.s32.totalorder %s961_s3, %s682_s15  ;;  %p688_p3 = scmp.lt.u32.totalorder %s682_s15, %s961_s3 }
 0x12a   : > { %p684_p0 = pnand %p683_p13, %p813_p2 }
 0x12c   : > { %p685_p1 = pneg %p684_p0 }
 0x12e   : > { %p690_p5 = pnand %p688_p3, %p685_p1 }
 0x130   : > { %693 = shalt.err (!%p690_p5)
}
 0x131   : > { %575 = dma.vmem_to_hbm [thread:$0]  (%p813_p2), %s419_s30, 128, %s961_s3, [#allocation5]  }
 0x132   : > { %719 = dma.done.wait (%p813_p2), [#allocation5], 128  }
 0x133   : > { %721 = vsyncadd (%p813_p2), [#allocation5], 4294967168 }
 0x134 PF: > { %p585_p4 = scmp.ge.s32.totalorder %s748_s17, 2  ;;  %s434_s7 = sand.u32 1, %s728_s12  }
 0x135   : > { %s435_s10 = scalar_lea.sflag [#allocation3], %s434_s7 }
 0x136   : > { %p580_p6 = pnand %p585_p4, %p830_p8 }
 0x138   : > { %723 = dma.done.wait (!%p580_p6), %s435_s10, 128  }
 0x139   : > { %725 = vsyncadd (!%p580_p6), %s435_s10, 4294967168  ;;  %s18_s17 = sadd.s32 1, %s748_s17   ;;  %s965_s12 = smov %s732_s13 }
 0x13a   : > { %p15_p7 = scmp.ge.s32.totalorder %s18_s17, 4   ;;  %s966_s13 = smov %s736_s14 }
 0x13b   : > { %s967_s14 = smov %s836_s26  ;;  %s968_s15 = smov %s744_s16 }
 0x13c   : > { %s969_s16 = smov %s971_s20  ;;  %17 = sbr.rel (!%p15_p7) target bundleno = 5 (0x5), region = 80 }
 0x143   :  { %440 = vsyncpa [#allocation3], 1 }
 0x144   :  { %442 = vsyncpa [#allocation3 + $0x1], 1 }
 0x145   :  { %443 = vsyncpa [#allocation5], 1 }

</bundles_post_ra>
